<compile_context>
chip_gen: v5e
topology: v5e:2x2
jax: 0.10.0
libtpu: 0.0.40
codegen_flags: <defaults>
</compile_context>

<pallas_src>
import jax
import jax.numpy as jnp
import numpy as np
from jax.experimental import pallas as pl
from jax.experimental.pallas import tpu as pltpu


def fused_affine_reduce_kernel(s_ref, x_ref, w_ref, o_ref):
    # s_ref: SMEM f32[4]           = [k0, k1, k2, bias]   (folded scalars)
    # x_ref: VMEM (3, rows, cols)  = per-channel input slabs (storage dtype)
    # w_ref: VMEM (rows, cols) f32 = Linear weight slab (always f32)
    # o_ref: SMEM f32[1]           = scalar output
    xk = (s_ref[0] * x_ref[0].astype(jnp.float32)
          + s_ref[1] * x_ref[1].astype(jnp.float32)
          + s_ref[2] * x_ref[2].astype(jnp.float32))          # VALU, stays in vregs
    o_ref[0] = jnp.sum(xk * w_ref[...]) + s_ref[3]            # one XLU reduce


def dynamic_control_model(x_nchw, params, storage_dtype=jnp.float32):
    """x_nchw: f32[1, 3, H, W] -> f32[1, 1]."""
    assert x_nchw is not None  # DynamicModel branch is always taken for a tensor
    n, c, h, w = x_nchw.shape
    assert n == 1 and c == 3
    hw = h * w

    eps = 1e-5
    inv_std = 1.0 / jnp.sqrt(params["bn_var"] + eps)
    bn_scale = (params["bn_gamma"] * inv_std).reshape(())
    bn_shift = (params["bn_beta"] - params["bn_mean"] * params["bn_gamma"] * inv_std
                ).reshape(())

    conv1_w = params["conv1_w"].reshape(c)       # (3,)
    conv1_b = params["conv1_b"].reshape(())
    w_dyn = params["conv2_w"].reshape(())
    b_dyn = params["conv2_b"].reshape(())
    lin_w = params["lin_w"].reshape(hw)          # (HW,)
    lin_b = params["lin_b"].reshape(())

    # Fold the affine chain into 3 per-channel scalars + 1 bias (O(HW) once,
    # outside the kernel — no 3*HW outer product is ever materialized).
    k = bn_scale * w_dyn * conv1_w                                           # (3,)
    bias = (bn_scale * (w_dyn * conv1_b + b_dyn) + bn_shift) * jnp.sum(lin_w) + lin_b
    scalars = jnp.concatenate([k, bias.reshape(1)]).astype(jnp.float32)      # (4,)

    # Dtype-aware dense slab layout: fill every packed vreg sublane and keep
    # the lane dim a multiple of 128 (zero padding is free for a dot product).
    itemsize = jnp.dtype(storage_dtype).itemsize
    rows = 32 // itemsize                        # 8 (f32) / 16 (bf16) / 32 (int8)
    pad_unit = rows * 128
    hw_pad = ((hw + pad_unit - 1) // pad_unit) * pad_unit
    cols = hw_pad // rows

    x_flat = x_nchw.reshape(c, hw)
    w_flat = lin_w
    if hw_pad != hw:
        x_flat = jnp.pad(x_flat, ((0, 0), (0, hw_pad - hw)))
        w_flat = jnp.pad(w_flat, (0, hw_pad - hw))
    x_slab = x_flat.astype(storage_dtype).reshape(c, rows, cols)
    w_slab = w_flat.astype(jnp.float32).reshape(rows, cols)   # weight stays f32

    # Single-block VMEM guard (v7x has only 32 MiB default scoped VMEM).
    vmem_bytes = c * hw_pad * itemsize + hw_pad * 4
    assert vmem_bytes < 24 * 1024 * 1024, (
        "working set too large for the gridless design; "
        "switch to a chunked 1-D grid (see TODO in header)")

    cost = pl.CostEstimate(
        flops=7 * hw_pad,                        # 4 mul + 2 add + 1 reduce-add / elem
        transcendentals=0,
        bytes_accessed=int(c * hw_pad * itemsize + hw_pad * 4 + 4 * 4 + 4),
    )

    out = pl.pallas_call(
        fused_affine_reduce_kernel,
        out_shape=jax.ShapeDtypeStruct((1,), jnp.float32),
        in_specs=[
            pl.BlockSpec(memory_space=pltpu.MemorySpace.SMEM),   # folded scalars
            pl.BlockSpec(memory_space=pltpu.MemorySpace.VMEM),   # x slabs
            pl.BlockSpec(memory_space=pltpu.MemorySpace.VMEM),   # lin_w slab (f32)
        ],
        out_specs=pl.BlockSpec(memory_space=pltpu.MemorySpace.SMEM),
        cost_estimate=cost,
    )(scalars, x_slab, w_slab)

    return out.reshape(1, 1)


def reference_forward(x_nchw, params):
    """Plain-JAX reference (mirrors the PyTorch forward, eval-mode BN)."""
    # Conv2d(3,1,1)
    y = jnp.einsum("nchw,c->nhw", x_nchw, params["conv1_w"].reshape(3))
    y = y[:, None, :, :] + params["conv1_b"].reshape(1, 1, 1, 1)
    # DynamicModel: Conv2d(1,1,1)  (branch is always taken for a real tensor)
    y = y * params["conv2_w"].reshape(()) + params["conv2_b"].reshape(())
    # BatchNorm2d(1), eval mode
    eps = 1e-5
    scale = params["bn_gamma"] / jnp.sqrt(params["bn_var"] + eps)
    y = (y - params["bn_mean"]) * scale + params["bn_beta"]
    # view(1, -1) + Linear
    flat = y.reshape(1, -1)
    return flat @ params["lin_w"].reshape(-1, 1) + params["lin_b"]


if __name__ == "__main__":
    H = W = 16          # scaled-down spatial size (original module uses 224x224)
    HW = H * W

    key = jax.random.PRNGKey(0)
    ks = jax.random.split(key, 10)

    params = {
        "conv1_w": jax.random.normal(ks[0], (1, 3, 1, 1), jnp.float32) * 0.5,
        "conv1_b": jax.random.normal(ks[1], (1,), jnp.float32) * 0.1,
        "conv2_w": jax.random.normal(ks[2], (1, 1, 1, 1), jnp.float32) * 0.5,
        "conv2_b": jax.random.normal(ks[3], (1,), jnp.float32) * 0.1,
        "bn_gamma": jnp.ones((1,), jnp.float32) * 1.2,
        "bn_beta": jnp.ones((1,), jnp.float32) * 0.3,
        "bn_mean": jnp.ones((1,), jnp.float32) * 0.05,
        "bn_var": jnp.ones((1,), jnp.float32) * 0.9,
        "lin_w": jax.random.normal(ks[4], (1, HW), jnp.float32) * (1.0 / HW),
        "lin_b": jax.random.normal(ks[5], (1,), jnp.float32) * 0.1,
    }

    x = jax.random.normal(ks[6], (1, 3, H, W), jnp.float32)

    ref = jax.block_until_ready(reference_forward(x, params))

    # f32 storage (default) -- exact match to the reference.
    out = jax.block_until_ready(dynamic_control_model(x, params))
    assert out.shape == (1, 1)
    assert np.allclose(np.asarray(out), np.asarray(ref), rtol=1e-5, atol=1e-5), (
        f"mismatch (f32): kernel={np.asarray(out)}, ref={np.asarray(ref)}")

    # bf16 storage of x only (memory-bound 224x224 configuration); lin_w and
    # all accumulation stay f32.
    out_bf16 = jax.block_until_ready(
        dynamic_control_model(x, params, storage_dtype=jnp.bfloat16))
    assert out_bf16.shape == (1, 1)
    assert np.allclose(np.asarray(out_bf16), np.asarray(ref), rtol=5e-2, atol=1e-2), (
        f"mismatch (bf16): kernel={np.asarray(out_bf16)}, ref={np.asarray(ref)}")

    print("KERNEL_OK")
</pallas_src>

<mosaic_0001>
module attributes {stable_mosaic.version = 11 : i64} {
  func.func @fused_affine_reduce_kernel(%arg0: memref<4xf32, #tpu.memory_space<smem>>, %arg1: memref<3x8x128xf32, #tpu.memory_space<vmem>>, %arg2: memref<8x128xf32, #tpu.memory_space<vmem>>, %arg3: memref<1xf32, #tpu.memory_space<smem>>) attributes {dimension_semantics = [], scalar_prefetch = 0 : i64, scratch_operands = 0 : i64, tpu.core_type = #tpu.core_type<tc>} {
    %c0 = arith.constant 0 : index
    %0 = memref.load %arg0[%c0] : memref<4xf32, #tpu.memory_space<smem>>
    %c0_0 = arith.constant 0 : index
    %c0_1 = arith.constant 0 : index
    %c0_2 = arith.constant 0 : index
    %1 = vector.load %arg1[%c0_0, %c0_1, %c0_2] : memref<3x8x128xf32, #tpu.memory_space<vmem>>, vector<1x8x128xf32>
    %2 = vector.shape_cast %1 : vector<1x8x128xf32> to vector<8x128xf32>
    %3 = vector.broadcast %0 : f32 to vector<8x128xf32>
    %4 = arith.mulf %3, %2 : vector<8x128xf32>
    %c1 = arith.constant 1 : index
    %5 = memref.load %arg0[%c1] : memref<4xf32, #tpu.memory_space<smem>>
    %c1_3 = arith.constant 1 : index
    %c0_4 = arith.constant 0 : index
    %c0_5 = arith.constant 0 : index
    %6 = vector.load %arg1[%c1_3, %c0_4, %c0_5] : memref<3x8x128xf32, #tpu.memory_space<vmem>>, vector<1x8x128xf32>
    %7 = vector.shape_cast %6 : vector<1x8x128xf32> to vector<8x128xf32>
    %8 = vector.broadcast %5 : f32 to vector<8x128xf32>
    %9 = arith.mulf %8, %7 : vector<8x128xf32>
    %10 = arith.addf %4, %9 : vector<8x128xf32>
    %c2 = arith.constant 2 : index
    %11 = memref.load %arg0[%c2] : memref<4xf32, #tpu.memory_space<smem>>
    %c2_6 = arith.constant 2 : index
    %c0_7 = arith.constant 0 : index
    %c0_8 = arith.constant 0 : index
    %12 = vector.load %arg1[%c2_6, %c0_7, %c0_8] : memref<3x8x128xf32, #tpu.memory_space<vmem>>, vector<1x8x128xf32>
    %13 = vector.shape_cast %12 : vector<1x8x128xf32> to vector<8x128xf32>
    %14 = vector.broadcast %11 : f32 to vector<8x128xf32>
    %15 = arith.mulf %14, %13 : vector<8x128xf32>
    %16 = arith.addf %10, %15 : vector<8x128xf32>
    %c0_9 = arith.constant 0 : index
    %c0_10 = arith.constant 0 : index
    %17 = vector.load %arg2[%c0_9, %c0_10] : memref<8x128xf32, #tpu.memory_space<vmem>>, vector<8x128xf32>
    %18 = arith.mulf %16, %17 : vector<8x128xf32>
    %19 = vector.shape_cast %18 : vector<8x128xf32> to vector<1x8x128xf32>
    %cst = arith.constant dense<0.000000e+00> : vector<1xf32>
    %20 = vector.multi_reduction <add>, %19, %cst [1, 2] : vector<1x8x128xf32> to vector<1xf32>
    %21 = vector.shape_cast %20 : vector<1xf32> to vector<1x1x1xf32>
    %22 = vector.extract %21[0, 0, 0] : f32 from vector<1x1x1xf32>
    %c3 = arith.constant 3 : index
    %23 = memref.load %arg0[%c3] : memref<4xf32, #tpu.memory_space<smem>>
    %24 = arith.addf %22, %23 : f32
    %c0_11 = arith.constant 0 : index
    %25 = memref.load %arg3[%c0_11] : memref<1xf32, #tpu.memory_space<smem>>
    memref.store %24, %arg3[%c0_11] : memref<1xf32, #tpu.memory_space<smem>>
    return
  }
}

</mosaic_0001>

<bundles_post_ra>
// kernel: tpu_custom_call.1
= control target key start
LH: loop header
LB: loop body
LE: loop exit
PB: predicated region body
PF: predicated region fallthrough
CT: control target
= control target key end

     0   :  { %8 = vsyncpa [#allocation4], 0  ;;  %s236_s0 = inlined_call_operand.hbm [shape: f32[4], index: 0, kind: input, shape index: {}]   ;;  %s237_s1 = inlined_call_operand.hbm [shape: f32[3,8,128], index: 1, kind: input, shape index: {}]   ;;  %s238_s2 = inlined_call_operand.hbm [shape: f32[8,128], index: 2, kind: input, shape index: {}]   ;;  %s239_s3 = inlined_call_operand.hbm [shape: f32[1], index: 3, kind: output, shape index: {}]  }
   0x1   :  { %9 = vsyncpa [#allocation3], 0 }
   0x2   :  { %10 = vsyncpa [#allocation8], 0 }
   0x3   :  { %11 = vsyncpa [#allocation5], 0  ;;  %s17_s14 = sshll.u32 %s236_s0, 4  ;;  %s25_s17 = sshll.u32 %s237_s1, 4  ;;  %s18_s14 = int_to_ptr.hbm [resolvable:$true] %s17_s14  ;;  %s26_s17 = int_to_ptr.hbm [resolvable:$true] %s25_s17 }
   0x4   :  { %s198_s18 = smov [#allocation2]   ;;  %s199_s19 = smov [#allocation6]  }
   0x5   :  { %20 = dma.hbm_to_smem %s18_s14, 16, %s198_s18, [#allocation4]  }
   0x6   :  { %s27_s20 = sshll.u32 %s199_s19, 4  ;;  %s200_s21 = smov 128   ;;  %s28_s20 = int_to_ptr.vmem [resolvable:$true] %s27_s20 }
   0x7   :  { %s201_s22 = smov 8   ;;  %s39_s25 = sshll.u32 %s238_s2, 4  ;;  %s40_s25 = int_to_ptr.hbm [resolvable:$true] %s39_s25 }
   0x8   :  { %33 = dma.hbm_to_vmem [thread:$0]  %s26_s17, 384, %s28_s20, [#allocation3], %s200_s21, %s200_s21, %s201_s22  }
   0x9   :  { %s202_s0 = smov [#allocation7]  }
   0xa   :  { %s41_s26 = sshll.u32 %s202_s0, 4  ;;  %s42_s26 = int_to_ptr.vmem [resolvable:$true] %s41_s26 }
   0xb   :  { %44 = dma.hbm_to_vmem [thread:$0]  %s40_s25, 128, %s42_s26, [#allocation8]  }
   0xc   :  { %190 = dma.done.wait [#allocation4], 16  }
   0xd   :  { %191 = vsyncadd [#allocation4], 4294967280 }
   0xe   :  { %192 = dma.done.wait [#allocation3], 384  }
   0xf   :  { %193 = vsyncadd [#allocation3], 4294966912 }
  0x10   :  { %194 = dma.done.wait [#allocation8], 128  }
  0x11   :  { %195 = vsyncadd [#allocation8], 4294967168 }
  0x12   :  { %57 = sfence }
  0x13   :  { %s58_s1 = sld [smem:[#allocation2]]  ;;  %v59_v0 = vld [vmem:[#allocation6] sm:$0xff]  ;;  %v64_v1 = vld [vmem:[#allocation6 + $0x8] sm:$0xff]  ;;  %v70_v3 = vld [vmem:[#allocation6 + $0x10] sm:$0xff]  ;;  %s94_s4 = sshll.u32 %s239_s3, 4  ;;  %s95_s4 = int_to_ptr.hbm [resolvable:$true] %s94_s4 }
  0x14   :  { %s107_s27 = sld [smem:[#allocation2 + $0x1]]  ;;  %v74_v10 = vld [vmem:[#allocation7] sm:$0xff]  ;;  %s203_s7 = smov [#allocation9]  }
  0x15   :  { %s108_s28 = sld [smem:[#allocation2 + $0x2]] }
  0x16   :  { %s109_s2 = sld [smem:[#allocation2 + $0x3]] }
  0x19   :  { %v60_v2 = vstv %s58_s1 }
  0x1a   :  { %v61_v4 = vmul.f32 %v60_v2, %v59_v0  ;;  %v65_v5 = vstv %s107_s27 }
  0x1b   :  { %v66_v6 = vmul.f32 %v65_v5, %v64_v1  ;;  %v71_v7 = vstv %s108_s28 }
  0x1c   :  { %v72_v8 = vmul.f32 %v71_v7, %v70_v3 }
  0x1d   :  { %v67_v9 = vadd.f32 %v66_v6, %v61_v4 }
  0x1f   :  { %v73_v11 = vadd.f32 %v72_v8, %v67_v9 }
  0x21   :  { %v75_v12 = vmul.f32 %v74_v10, %v73_v11 }
  0x23   :  { %76 = vadd.xlane.f32.xlu0 %v75_v12 }
  0x96   :  { %v77_v13 = vpop.xlane.xlu0 %76 }
  0x97   :  { %v78_v14 = vrot.slane %v77_v13, 4 }
  0x99   :  { %v79_v15 = vadd.f32 %v78_v14, %v77_v13 }
  0x9b   :  { %v80_v16 = vrot.slane %v79_v15, 2 }
  0x9d   :  { %v81_v17 = vadd.f32 %v80_v16, %v79_v15 }
  0x9f   :  { %v82_v18 = vrot.slane %v81_v17, 1 }
  0xa1   :  { %v83_v19 = vadd.f32 %v82_v18, %v81_v17 }
  0xa3   :  { %110 = vpush %v83_v19 }
  0xd4   :  { %s111_s5 = spop %110 }
  0xd5   :  { %s86_s6 = sadd.f32 %s111_s5, %s109_s2 }
  0xd7   :  { %88 = sst [smem:[#allocation9]] %s86_s6 }
  0xd8   :  { %97 = dma.smem_to_hbm %s203_s7, 16, %s95_s4, [#allocation5]  }
  0xd9   :  { %196 = dma.done.wait [#allocation5], 16  }
  0xda   :  { %197 = vsyncadd [#allocation5], 4294967280 }
  0xdb   :  { %102 = sfence }
  0xdc   :  { %103 = vsyncpa [#allocation3], 1 }
  0xdd   :  { %104 = vsyncpa [#allocation8], 1 }
  0xde   :  { %105 = vsyncpa [#allocation4], 1 }
  0xdf   :  { %106 = vsyncpa [#allocation5], 1 }

</bundles_post_ra>
